<compile_context>
chip_gen: v7x
topology: tpu7x:2x2x1
jax: 0.10.0
libtpu: 0.0.40
codegen_flags: <defaults>
</compile_context>

<pallas_src>
import jax
import jax.numpy as jnp
from jax.experimental import pallas as pl
from jax.experimental.pallas import tpu as pltpu

_LANES = 128           # vreg lane width
_SUBLANES = 8          # vreg sublane depth
_VREG = _SUBLANES * _LANES   # 1024 f32 elements per vreg
_MAX_TILE_ROWS = 512   # row-tile cap for large batches (well inside VMEM)


def _sigmoid_kernel(x_ref, o_ref):
    # Elementwise logistic on the whole lane-dense tile.  jax.nn.sigmoid lowers
    # to the logistic op: exp + reciprocal run on the EUP slot (otherwise idle),
    # math stays in f32 (v5e EUP has no bf16 path).
    o_ref[...] = jax.nn.sigmoid(x_ref[...])


def sigmoid_pallas(x_flat: jax.Array) -> jax.Array:
    """Elementwise sigmoid over a flat f32 parameter vector.

    Pads N up to a whole number of (tile_rows, 128) tiles so every store is an
    unmasked, lane-dense vst, runs one grid step per row tile, and slices the
    valid prefix back out.  For SimpleBernoulli N == 1 -> a single (8, 128) tile.
    """
    n = x_flat.shape[0]
    if x_flat.dtype != jnp.float32:
        x_flat = x_flat.astype(jnp.float32)

    # Pad to a multiple of one vreg, then to a multiple of the row tile.
    rows = (pl.cdiv(n, _VREG) * _VREG) // _LANES          # multiple of 8
    tile_rows = min(rows, _MAX_TILE_ROWS)
    rows = pl.cdiv(rows, tile_rows) * tile_rows           # multiple of tile_rows
    n_pad = rows * _LANES

    x2d = jnp.pad(x_flat, (0, n_pad - n)).reshape(rows, _LANES)

    out2d = pl.pallas_call(
        _sigmoid_kernel,
        out_shape=jax.ShapeDtypeStruct((rows, _LANES), jnp.float32),
        grid=(rows // tile_rows,),
        in_specs=[pl.BlockSpec((tile_rows, _LANES), lambda i: (i, 0))],
        out_specs=pl.BlockSpec((tile_rows, _LANES), lambda i: (i, 0)),
        # sigmoid in place over the padded staging buffer: no separate output alloc.
        input_output_aliases={0: 0},
        compiler_params=pltpu.CompilerParams(
            dimension_semantics=("parallel",)),
    )(x2d)

    return out2d.reshape(-1)[:n]


def simple_bernoulli_forward(theta: jax.Array) -> jax.Array:
    """theta: shape (1,) float32  ->  sigmoid(theta): shape (1,) float32."""
    # TODO(synk): in production, skip the Pallas launch entirely for N==1 and let
    # XLA fuse jax.nn.sigmoid(theta) into the consumer (REBAR sampling/loss).
    return sigmoid_pallas(theta.reshape(-1))


if __name__ == "__main__":
    # Deterministic parameter init mirroring SimpleBernoulli(init_value=0.5).
    init_value = 0.5
    theta = jnp.array([init_value], dtype=jnp.float32)

    # PRNGKey(0) only to honor the deterministic-input convention; the module
    # has no data inputs, just the single parameter.
    _ = jax.random.PRNGKey(0)

    out = jax.block_until_ready(simple_bernoulli_forward(theta))

    # Cross-check against the pure-JAX reference.
    ref = jax.nn.sigmoid(theta)
    assert out.shape == (1,), out.shape
    assert jnp.allclose(out, ref, atol=1e-6), (out, ref)

    # Also exercise the batched (lane-dense, multi-tile) path of the kernel.
    big = jax.random.normal(jax.random.PRNGKey(0), (5000,), dtype=jnp.float32)
    out_big = jax.block_until_ready(sigmoid_pallas(big))
    assert jnp.allclose(out_big, jax.nn.sigmoid(big), atol=1e-6)

    print("KERNEL_OK")
</pallas_src>

<mosaic_0001>
module attributes {stable_mosaic.version = 11 : i64} {
  func.func @_sigmoid_kernel(%arg0: i32, %arg1: memref<8x128xf32, #tpu.memory_space<vmem>>, %arg2: memref<8x128xf32, #tpu.memory_space<vmem>>) attributes {dimension_semantics = [#tpu.dimension_semantics<parallel>], iteration_bounds = array<i64: 1>, scalar_prefetch = 0 : i64, scratch_operands = 0 : i64, tpu.core_type = #tpu.core_type<tc>, window_params = [{transform_indices = @transform_0, window_bounds = array<i64: 8, 128>}, {transform_indices = @transform_1, window_bounds = array<i64: 8, 128>}]} {
    %c0 = arith.constant 0 : index
    %c0_0 = arith.constant 0 : index
    %0 = vector.load %arg1[%c0, %c0_0] : memref<8x128xf32, #tpu.memory_space<vmem>>, vector<8x128xf32>
    %1 = arith.negf %0 : vector<8x128xf32>
    %2 = math.exp %1 : vector<8x128xf32>
    %cst = arith.constant 1.000000e+00 : f32
    %3 = vector.broadcast %cst : f32 to vector<8x128xf32>
    %4 = arith.addf %3, %2 : vector<8x128xf32>
    %5 = arith.divf %3, %4 : vector<8x128xf32>
    %c0_1 = arith.constant 0 : index
    %c0_2 = arith.constant 0 : index
    %6 = vector.load %arg2[%c0_1, %c0_2] : memref<8x128xf32, #tpu.memory_space<vmem>>, vector<8x128xf32>
    tpu.vector_store %arg2[%c0_1, %c0_2], %5 {strides = array<i32>} : memref<8x128xf32, #tpu.memory_space<vmem>>, vector<8x128xf32>,
    return
  }
  func.func @transform_0(%arg0: i32) -> (i32, i32) {
    %c0_i32 = arith.constant 0 : i32
    %c0_i32_0 = arith.constant 0 : i32
    return %arg0, %c0_i32 : i32, i32
  }
  func.func @transform_1(%arg0: i32) -> (i32, i32) {
    %c0_i32 = arith.constant 0 : i32
    %c0_i32_0 = arith.constant 0 : i32
    return %arg0, %c0_i32 : i32, i32
  }
}

</mosaic_0001>

<bundles_post_ra>
// kernel: tpu_custom_call.1
= control target key start
LH: loop header
LB: loop body
LE: loop exit
PB: predicated region body
PF: predicated region fallthrough
CT: control target
= control target key end

     0   :  { %6 = vsyncpa [#allocation3], 0  ;;  %s135_s0 = inlined_call_operand.hbm [shape: f32[8,128], index: 0, kind: input, shape index: {}, may-alias: {0,1}]   ;;  %s136_s1 = inlined_call_operand.hbm [shape: f32[8,128], index: 1, kind: output, shape index: {}, may-alias: {0,1}]  }
   0x1   :  { %7 = vsyncpa [#allocation4], 0  ;;  %s99_s6 = smov [#allocation2]   ;;  %s51_s10 = scalar_lea.hbm %s135_s0, 128 }
   0x2   :  { %s14_s7 = sshll.u32 %s99_s6, 4  ;;  %p52_p0 = scmp.ne.s32.totalorder %s135_s0, %s51_s10  ;;  %s15_s7 = int_to_ptr.vmem [resolvable:$true] %s14_s7 }
   0x3   :  { %p55_p1 = scmp.lt.u32.totalorder %s51_s10, %s135_s0 }
   0x5   :  { %p57_p2 = pnand %p55_p1, %p52_p0 }
   0x7   :  { %60 = shalt.err (!%p57_p2)
}
   0x8   :  { %s61_s15 = scalar_lea.vmem %s15_s7, 128  ;;  %p66_p4 = scmp.lt.s32.totalorder %s15_s7, %s15_s7 }
   0x9   :  { %p62_p3 = scmp.ne.s32.totalorder %s15_s7, %s61_s15  ;;  %p67_p5 = scmp.lt.s32.totalorder %s61_s15, %s61_s15 }
   0xb   :  { %p68_p6 = por %p67_p5, %p66_p4 }
   0xd   :  { %p69_p7 = pnand %p68_p6, %p62_p3 }
   0xf   :  { %72 = shalt.err (!%p69_p7)
}
  0x10   :  { %17 = dma.hbm_to_vmem [thread:$0]  %s135_s0, 128, %s15_s7, [#allocation3]  }
  0x11   :  { %95 = dma.done.wait [#allocation3], 128  }
  0x12   :  { %96 = vsyncadd [#allocation3], 4294967168  ;;  %v21_v0 = vld [vmem:[#allocation2] sm:$0xff]  ;;  %s100_s18 = smov [#allocation5]  }
  0x13   :  { %v44_v1 = vmul.f32 -1.442695, %v21_v0  ;;  %s35_s19 = sshll.u32 %s100_s18, 4  ;;  %s36_s19 = int_to_ptr.vmem [resolvable:$true] %s35_s19 }
  0x14   :  { %s73_s20 = scalar_lea.vmem %s36_s19, 128  ;;  %p78_p9 = scmp.lt.s32.totalorder %s36_s19, %s36_s19 }
  0x15   :  { %47 = vpow2.f32 %v44_v1  ;;  %p74_p8 = scmp.ne.s32.totalorder %s36_s19, %s73_s20  ;;  %p79_p10 = scmp.lt.s32.totalorder %s73_s20, %s73_s20 }
  0x17   :  { %p80_p11 = por %p79_p10, %p78_p9 }
  0x19   :  { %p81_p12 = pnand %p80_p11, %p74_p8 }
  0x1f   :  { %v48_v2 = vpop.eup %47 }
  0x20   :  { %v25_v3 = vadd.f32 1.0, %v48_v2 }
  0x22   :  { %49 = vrcp.f32 %v25_v3 }
  0x2c   :  { %v50_v4 = vpop.eup %49 }
  0x2d   :  { %28 = vst [vmem:[#allocation5] sm:$0xff] %v50_v4 }
  0x2e   :  { %84 = shalt.err (!%p81_p12)
}
  0x2f   :  { %s85_s22 = scalar_lea.hbm %s136_s1, 128 }
  0x30   :  { %p86_p13 = scmp.ne.s32.totalorder %s136_s1, %s85_s22  ;;  %p89_p0 = scmp.lt.u32.totalorder %s85_s22, %s136_s1 }
  0x32   :  { %p91_p1 = pnand %p89_p0, %p86_p13 }
  0x34   :  { %94 = shalt.err (!%p91_p1)
}
  0x35   :  { %38 = dma.vmem_to_hbm [thread:$0]  %s36_s19, 128, %s136_s1, [#allocation4]  }
  0x36   :  { %97 = dma.done.wait [#allocation4], 128  }
  0x37   :  { %98 = vsyncadd [#allocation4], 4294967168 }
  0x38   :  { %42 = vsyncpa [#allocation3], 1 }
  0x39   :  { %43 = vsyncpa [#allocation4], 1 }

</bundles_post_ra>
